<compile_context>
chip_gen: v7x
topology: tpu7x:2x2x1
jax: 0.10.0
libtpu: 0.0.40
codegen_flags: <defaults>
</compile_context>

<pallas_src>
import functools

import jax
import jax.numpy as jnp
from jax.experimental import pallas as pl
from jax.experimental.pallas import tpu as pltpu

# settings stand-ins (settings.py not available)
IGNORE_LABEL = -1   # TODO(synk): settings.IGNORE_LABEL unknown; using -1
N_CLASSES = 5
HIDDEN = 32         # TODO(synk): real backbone width; 128 would fill MXU N better


# ---------------------------------------------------------------------------
# Fused FCN body: conv1(3x3)+ReLU -> conv2(3x3)+ReLU -> 1x1 score, all in VMEM
# ---------------------------------------------------------------------------
def _fcn_score_tile(x_ref, valid_ref, w1_ref, b1_ref, w2_ref, b2_ref,
                    w3_ref, b3_ref, h1pad_ref, *, H, W):
    """Returns (n_classes, M) f32 logits for the current image, M = H*(W+2).

    Layout: channels on sublanes, flattened padded spatial on lanes.
      x_ref     : (1, Cin, Hpf*Wp) bf16, zero-padded (top 1, bottom 2, l/r 1)
      valid_ref : (1, M) f32, 1.0 where the extended column is a real pixel
      h1pad_ref : (C1, Hpf*Wp) bf16 VMEM scratch (conv2's zero ring lives here)
    Extended columns with (col % Wp) >= W are junk produced by the
    flatten-with-pad trick; they are masked to 0 before landing on the zero
    ring and are cropped (eval) / label-ignored (train) downstream.
    """
    Wp = W + 2
    M = H * Wp
    C1 = w2_ref.shape[0]
    offs = [dy * Wp + dx for dy in range(3) for dx in range(3)]

    # conv1: fold the 9 taps into K = 9*Cin -> a single MXU dot.
    x = x_ref[0]                                                  # (Cin, Hpf*Wp)
    k1 = jnp.concatenate([x[:, o:o + M] for o in offs], axis=0)   # (9*Cin, M)
    h1 = jnp.maximum(
        jnp.dot(w1_ref[...], k1, preferred_element_type=jnp.float32)
        + b1_ref[...], 0.0)                                       # (C1, M) f32
    h1 = h1 * valid_ref[...]          # junk pad columns -> exact zeros

    # Stash h1 with a zero ring so conv2 sees torch padding=1 semantics.  The
    # masked interior store already writes the horizontal ring; only the head
    # (top pad row + row-1 left pad) and tail (bottom pad rows) strips need
    # explicit zeroing - no full-scratch clear per grid step.
    hpf_wp = h1pad_ref.shape[1]
    h1pad_ref[:, 0:Wp + 1] = jnp.zeros((C1, Wp + 1), h1pad_ref.dtype)
    h1pad_ref[:, Wp + 1:Wp + 1 + M] = h1.astype(h1pad_ref.dtype)
    h1pad_ref[:, Wp + 1 + M:hpf_wp] = jnp.zeros(
        (C1, hpf_wp - (Wp + 1 + M)), h1pad_ref.dtype)

    # conv2: fold the 9 taps into K = 9*C1 -> a single MXU dot.
    hp = h1pad_ref[...]                                           # (C1, Hpf*Wp)
    k2 = jnp.concatenate([hp[:, o:o + M] for o in offs], axis=0)  # (9*C1, M)
    h2 = jnp.maximum(
        jnp.dot(w2_ref[...], k2, preferred_element_type=jnp.float32)
        + b2_ref[...], 0.0)                                       # (C1, M) f32

    # 1x1 score conv fused as an epilogue; already (NC, M) lane-dense.
    return jnp.dot(w3_ref[...], h2.astype(jnp.bfloat16),
                   preferred_element_type=jnp.float32) + b3_ref[...]


def _fcn_eval_kernel(x_ref, valid_ref, w1_ref, b1_ref, w2_ref, b2_ref,
                     w3_ref, b3_ref, o_ref, h1pad_ref, *, H, W):
    score = _fcn_score_tile(x_ref, valid_ref, w1_ref, b1_ref, w2_ref, b2_ref,
                            w3_ref, b3_ref, h1pad_ref, H=H, W=W)
    o_ref[0] = score.astype(o_ref.dtype)          # (NC, H*Wp), lane-dense


def _fcn_loss_kernel(x_ref, valid_ref, w1_ref, b1_ref, w2_ref, b2_ref,
                     w3_ref, b3_ref, lbl_ref, o_ref, h1pad_ref,
                     *, H, W, ignore_index):
    score = _fcn_score_tile(x_ref, valid_ref, w1_ref, b1_ref, w2_ref, b2_ref,
                            w3_ref, b3_ref, h1pad_ref, H=H, W=W)
    NC, M = score.shape

    # log_softmax over the class (sublane) axis, max-subtracted, f32.
    m = jnp.max(score, axis=0, keepdims=True)
    lse = jnp.log(jnp.sum(jnp.exp(score - m), axis=0, keepdims=True)) + m
    logp = score - lse                                        # (NC, M)

    lbl = lbl_ref[0]                                          # (1, M) int32
    cls = jax.lax.broadcasted_iota(jnp.int32, (NC, M), 0)
    onehot = (cls == lbl).astype(jnp.float32)
    nll = -jnp.sum(logp * onehot, axis=0, keepdims=True)      # (1, M)
    nll = jnp.where(lbl != ignore_index, nll, 0.0)            # ignored/junk -> 0
    # .mean(dim=2).mean(dim=1) == sum over the real H*W pixels / (H*W)
    o_ref[0] = jnp.sum(nll, axis=1, keepdims=True) * (1.0 / (H * W))


# ---------------------------------------------------------------------------
# pallas_call wrappers
# ---------------------------------------------------------------------------
def _weight_specs(Cin, C1, NC):
    return [
        pl.BlockSpec((C1, 9 * Cin), lambda b: (0, 0)),
        pl.BlockSpec((C1, 1), lambda b: (0, 0)),
        pl.BlockSpec((C1, 9 * C1), lambda b: (0, 0)),
        pl.BlockSpec((C1, 1), lambda b: (0, 0)),
        pl.BlockSpec((NC, C1), lambda b: (0, 0)),
        pl.BlockSpec((NC, 1), lambda b: (0, 0)),
    ]


def _prep_operands(params, img_nchw):
    B, Cin, H, W = img_nchw.shape
    C1 = params["w1"].shape[-1]
    NC = params["w3"].shape[-1]
    Wp, Hpf = W + 2, H + 3          # +1 top, +2 bottom, +1 left/right zero pad
    M = H * Wp                      # extended output columns (incl. pad cols)

    xpad = jnp.pad(img_nchw, ((0, 0), (0, 0), (1, 2), (1, 1)))
    x_flat = xpad.reshape(B, Cin, Hpf * Wp).astype(jnp.bfloat16)
    valid = ((jnp.arange(M) % Wp) < W).astype(jnp.float32).reshape(1, M)

    # weights reshaped to (C_out, 9*C_in) matching the (dy, dx, cin) tap order
    w1m = jnp.transpose(params["w1"], (3, 0, 1, 2)).reshape(C1, 9 * Cin)
    w2m = jnp.transpose(params["w2"], (3, 0, 1, 2)).reshape(C1, 9 * C1)
    w3m = jnp.transpose(params["w3"], (3, 0, 1, 2)).reshape(NC, C1)
    args = (x_flat, valid,
            w1m.astype(jnp.bfloat16), params["b1"].reshape(C1, 1),
            w2m.astype(jnp.bfloat16), params["b2"].reshape(C1, 1),
            w3m.astype(jnp.bfloat16), params["b3"].reshape(NC, 1))
    dims = dict(B=B, Cin=Cin, H=H, W=W, C1=C1, NC=NC, Wp=Wp, Hpf=Hpf, M=M)
    return args, dims


def _fcn_forward_pred(params, img_nchw):
    args, d = _prep_operands(params, img_nchw)
    B, Cin, H, W = d["B"], d["Cin"], d["H"], d["W"]
    C1, NC, Wp, Hpf, M = d["C1"], d["NC"], d["Wp"], d["Hpf"], d["M"]
    out = pl.pallas_call(
        functools.partial(_fcn_eval_kernel, H=H, W=W),
        out_shape=jax.ShapeDtypeStruct((B, NC, M), jnp.float32),
        grid_spec=pltpu.PrefetchScalarGridSpec(
            num_scalar_prefetch=0,
            grid=(B,),
            in_specs=[pl.BlockSpec((1, Cin, Hpf * Wp), lambda b: (b, 0, 0)),
                      pl.BlockSpec((1, M), lambda b: (0, 0))]
                     + _weight_specs(Cin, C1, NC),
            out_specs=pl.BlockSpec((1, NC, M), lambda b: (b, 0, 0)),
            scratch_shapes=[pltpu.VMEM((C1, Hpf * Wp), jnp.bfloat16)],
        ),
        compiler_params=pltpu.CompilerParams(
            dimension_semantics=("parallel",)),
    )(*args)
    # lane-dense (B, NC, H*Wp) -> free reshape + crop of the 2 pad columns.
    return out.reshape(B, NC, H, Wp)[..., :W]


def _fcn_forward_loss(params, img_nchw, lbl):
    args, d = _prep_operands(params, img_nchw)
    B, Cin, H, W = d["B"], d["Cin"], d["H"], d["W"]
    C1, NC, Wp, Hpf, M = d["C1"], d["NC"], d["Wp"], d["Hpf"], d["M"]
    # pad label rows with IGNORE so junk extended columns contribute 0 loss
    lbl_ext = jnp.pad(lbl.astype(jnp.int32), ((0, 0), (0, 0), (0, 2)),
                      constant_values=IGNORE_LABEL).reshape(B, 1, M)
    out = pl.pallas_call(
        functools.partial(_fcn_loss_kernel, H=H, W=W,
                          ignore_index=IGNORE_LABEL),
        out_shape=jax.ShapeDtypeStruct((B, 1, 1), jnp.float32),
        grid_spec=pltpu.PrefetchScalarGridSpec(
            num_scalar_prefetch=0,
            grid=(B,),
            in_specs=[pl.BlockSpec((1, Cin, Hpf * Wp), lambda b: (b, 0, 0)),
                      pl.BlockSpec((1, M), lambda b: (0, 0))]
                     + _weight_specs(Cin, C1, NC)
                     + [pl.BlockSpec((1, 1, M), lambda b: (b, 0, 0))],
            out_specs=pl.BlockSpec((1, 1, 1), lambda b: (b, 0, 0)),
            scratch_shapes=[pltpu.VMEM((C1, Hpf * Wp), jnp.bfloat16)],
        ),
        compiler_params=pltpu.CompilerParams(
            dimension_semantics=("parallel",)),
    )(*args, lbl_ext)
    return out.reshape(B)


# ---------------------------------------------------------------------------
# Parameters + forward (Seg_FCN_Net semantics)
# ---------------------------------------------------------------------------
def init_params(key, in_ch, hidden, n_classes):
    k1, k2, k3 = jax.random.split(key, 3)
    return {
        "w1": 0.1 * jax.random.normal(k1, (3, 3, in_ch, hidden), jnp.float32),
        "b1": jnp.zeros((hidden,), jnp.float32),
        "w2": 0.1 * jax.random.normal(k2, (3, 3, hidden, hidden), jnp.float32),
        "b2": jnp.zeros((hidden,), jnp.float32),
        "w3": 0.1 * jax.random.normal(k3, (1, 1, hidden, n_classes), jnp.float32),
        "b3": jnp.zeros((n_classes,), jnp.float32),
    }


def seg_fcn_net_forward(params, img_nchw, lbl=None, training=False):
    """img_nchw: (B, C, H, W) float.  lbl: (B, H, W) int (ignore == -1)."""
    if training and lbl is not None:
        return _fcn_forward_loss(params, img_nchw, lbl)
    return _fcn_forward_pred(params, img_nchw)


# ---------------------------------------------------------------------------
# pure-XLA fp32 reference (sanity check only)
# ---------------------------------------------------------------------------
def _reference_forward(params, img, lbl=None, training=False):
    dn = ("NCHW", "HWIO", "NCHW")
    h = jax.lax.conv_general_dilated(img, params["w1"], (1, 1), "SAME",
                                     dimension_numbers=dn)
    h = jax.nn.relu(h + params["b1"].reshape(1, -1, 1, 1))
    h = jax.lax.conv_general_dilated(h, params["w2"], (1, 1), "SAME",
                                     dimension_numbers=dn)
    h = jax.nn.relu(h + params["b2"].reshape(1, -1, 1, 1))
    score = jax.lax.conv_general_dilated(h, params["w3"], (1, 1), "SAME",
                                         dimension_numbers=dn)
    score = score + params["b3"].reshape(1, -1, 1, 1)
    if training and lbl is not None:
        logp = jax.nn.log_softmax(score, axis=1)
        oh = jax.nn.one_hot(jnp.clip(lbl, 0, None), score.shape[1], axis=1)
        nll = -jnp.sum(logp * oh, axis=1)
        nll = jnp.where(lbl != IGNORE_LABEL, nll, 0.0)
        return nll.mean(axis=(1, 2))
    return score


if __name__ == "__main__":
    key = jax.random.PRNGKey(0)
    kp, ki, kl = jax.random.split(key, 3)
    B, Cin, H, W = 2, 3, 16, 16

    params = init_params(kp, Cin, HIDDEN, N_CLASSES)
    img = jax.random.normal(ki, (B, Cin, H, W), jnp.float32)
    # labels in [-1, N_CLASSES): includes the ignore label (-1)
    lbl = jax.random.randint(kl, (B, H, W), -1, N_CLASSES)

    pred = seg_fcn_net_forward(params, img, training=False)          # eval path
    loss = seg_fcn_net_forward(params, img, lbl=lbl, training=True)  # train path
    jax.block_until_ready((pred, loss))

    assert pred.shape == (B, N_CLASSES, H, W)
    assert loss.shape == (B,)
    assert bool(jnp.all(jnp.isfinite(pred))) and bool(jnp.all(jnp.isfinite(loss)))

    # loose sanity check vs fp32 XLA reference (kernel uses bf16 MXU operands)
    pred_ref = _reference_forward(params, img)
    loss_ref = _reference_forward(params, img, lbl=lbl, training=True)
    assert float(jnp.max(jnp.abs(pred - pred_ref))) < 0.25
    assert float(jnp.max(jnp.abs(loss - loss_ref))) < 0.1
    print("KERNEL_OK")
</pallas_src>

<mosaic_0001>
module attributes {stable_mosaic.version = 11 : i64} {
  func.func @_fcn_eval_kernel(%arg0: i32, %arg1: memref<1x3x342xbf16, #tpu.memory_space<vmem>>, %arg2: memref<1x288xf32, #tpu.memory_space<vmem>>, %arg3: memref<32x27xbf16, #tpu.memory_space<vmem>>, %arg4: memref<32x1xf32, #tpu.memory_space<vmem>>, %arg5: memref<32x288xbf16, #tpu.memory_space<vmem>>, %arg6: memref<32x1xf32, #tpu.memory_space<vmem>>, %arg7: memref<5x32xbf16, #tpu.memory_space<vmem>>, %arg8: memref<5x1xf32, #tpu.memory_space<vmem>>, %arg9: memref<1x5x288xf32, #tpu.memory_space<vmem>>, %arg10: memref<32x342xbf16, #tpu.memory_space<vmem>>) attributes {dimension_semantics = [#tpu.dimension_semantics<parallel>], iteration_bounds = array<i64: 2>, scalar_prefetch = 0 : i64, scratch_operands = 1 : i64, tpu.core_type = #tpu.core_type<tc>, window_params = [{transform_indices = @transform_0, window_bounds = array<i64: 1, 3, 342>}, {pipeline_mode = #tpu.pipeline_mode<synchronous>, transform_indices = @transform_1, window_bounds = array<i64: 1, 288>}, {pipeline_mode = #tpu.pipeline_mode<synchronous>, transform_indices = @transform_2, window_bounds = array<i64: 32, 27>}, {pipeline_mode = #tpu.pipeline_mode<synchronous>, transform_indices = @transform_3, window_bounds = array<i64: 32, 1>}, {pipeline_mode = #tpu.pipeline_mode<synchronous>, transform_indices = @transform_4, window_bounds = array<i64: 32, 288>}, {pipeline_mode = #tpu.pipeline_mode<synchronous>, transform_indices = @transform_5, window_bounds = array<i64: 32, 1>}, {pipeline_mode = #tpu.pipeline_mode<synchronous>, transform_indices = @transform_6, window_bounds = array<i64: 5, 32>}, {pipeline_mode = #tpu.pipeline_mode<synchronous>, transform_indices = @transform_7, window_bounds = array<i64: 5, 1>}, {transform_indices = @transform_8, window_bounds = array<i64: 1, 5, 288>}]} {
    %c0 = arith.constant 0 : index
    %c0_0 = arith.constant 0 : index
    %c0_1 = arith.constant 0 : index
    %0 = vector.load %arg1[%c0, %c0_0, %c0_1] : memref<1x3x342xbf16, #tpu.memory_space<vmem>>, vector<1x3x342xbf16>
    %1 = vector.shape_cast %0 : vector<1x3x342xbf16> to vector<3x342xbf16>
    %2 = vector.extract_strided_slice %1 {offsets = [0, 0], sizes = [3, 288], strides = [1, 1]} : vector<3x342xbf16> to vector<3x288xbf16>
    %3 = vector.extract_strided_slice %1 {offsets = [0, 1], sizes = [3, 288], strides = [1, 1]} : vector<3x342xbf16> to vector<3x288xbf16>
    %4 = vector.extract_strided_slice %1 {offsets = [0, 2], sizes = [3, 288], strides = [1, 1]} : vector<3x342xbf16> to vector<3x288xbf16>
    %5 = vector.extract_strided_slice %1 {offsets = [0, 18], sizes = [3, 288], strides = [1, 1]} : vector<3x342xbf16> to vector<3x288xbf16>
    %6 = vector.extract_strided_slice %1 {offsets = [0, 19], sizes = [3, 288], strides = [1, 1]} : vector<3x342xbf16> to vector<3x288xbf16>
    %7 = vector.extract_strided_slice %1 {offsets = [0, 20], sizes = [3, 288], strides = [1, 1]} : vector<3x342xbf16> to vector<3x288xbf16>
    %8 = vector.extract_strided_slice %1 {offsets = [0, 36], sizes = [3, 288], strides = [1, 1]} : vector<3x342xbf16> to vector<3x288xbf16>
    %9 = vector.extract_strided_slice %1 {offsets = [0, 37], sizes = [3, 288], strides = [1, 1]} : vector<3x342xbf16> to vector<3x288xbf16>
    %10 = vector.extract_strided_slice %1 {offsets = [0, 38], sizes = [3, 288], strides = [1, 1]} : vector<3x342xbf16> to vector<3x288xbf16>
    %11 = tpu.concatenate %2, %3, %4, %5, %6, %7, %8, %9, %10 in 0 : vector<3x288xbf16>, vector<3x288xbf16>, vector<3x288xbf16>, vector<3x288xbf16>, vector<3x288xbf16>, vector<3x288xbf16>, vector<3x288xbf16>, vector<3x288xbf16>, vector<3x288xbf16> -> vector<27x288xbf16>
    %c0_2 = arith.constant 0 : index
    %c0_3 = arith.constant 0 : index
    %12 = vector.load %arg3[%c0_2, %c0_3] : memref<32x27xbf16, #tpu.memory_space<vmem>>, vector<32x27xbf16>
    %cst = arith.constant dense<0.000000e+00> : vector<32x288xf32>
    %13 = tpu.matmul %12, %11, %cst {dimension_numbers = #tpu.dot_dimension_numbers<[1], [0], [0], [1], [0, 0, 1, 1], [], []>} : vector<32x27xbf16>, vector<27x288xbf16>, vector<32x288xf32> -> vector<32x288xf32>
    %c0_4 = arith.constant 0 : index
    %c0_5 = arith.constant 0 : index
    %14 = vector.load %arg4[%c0_4, %c0_5] : memref<32x1xf32, #tpu.memory_space<vmem>>, vector<32x1xf32>
    %15 = vector.broadcast %14 : vector<32x1xf32> to vector<32x288xf32>
    %16 = arith.addf %13, %15 : vector<32x288xf32>
    %cst_6 = arith.constant 0.000000e+00 : f32
    %17 = vector.broadcast %cst_6 : f32 to vector<32x288xf32>
    %18 = arith.maximumf %16, %17 : vector<32x288xf32>
    %c0_7 = arith.constant 0 : index
    %c0_8 = arith.constant 0 : index
    %19 = vector.load %arg2[%c0_7, %c0_8] : memref<1x288xf32, #tpu.memory_space<vmem>>, vector<1x288xf32>
    %20 = vector.broadcast %19 : vector<1x288xf32> to vector<32x288xf32>
    %21 = arith.mulf %18, %20 : vector<32x288xf32>
    %cst_9 = arith.constant 0.000000e+00 : bf16
    %22 = vector.broadcast %cst_9 : bf16 to vector<32x19xbf16>
    %c0_10 = arith.constant 0 : index
    %c0_11 = arith.constant 0 : index
    %23 = vector.load %arg10[%c0_10, %c0_11] : memref<32x342xbf16, #tpu.memory_space<vmem>>, vector<32x19xbf16>
    tpu.vector_store %arg10[%c0_10, %c0_11], %22 {strides = array<i32>} : memref<32x342xbf16, #tpu.memory_space<vmem>>, vector<32x19xbf16>,
    %24 = arith.truncf %21 : vector<32x288xf32> to vector<32x288xbf16>
    %c0_12 = arith.constant 0 : index
    %c19 = arith.constant 19 : index
    %25 = vector.load %arg10[%c0_12, %c19] : memref<32x342xbf16, #tpu.memory_space<vmem>>, vector<32x288xbf16>
    tpu.vector_store %arg10[%c0_12, %c19], %24 {strides = array<i32>} : memref<32x342xbf16, #tpu.memory_space<vmem>>, vector<32x288xbf16>,
    %cst_13 = arith.constant 0.000000e+00 : bf16
    %26 = vector.broadcast %cst_13 : bf16 to vector<32x35xbf16>
    %c0_14 = arith.constant 0 : index
    %c307 = arith.constant 307 : index
    %27 = vector.load %arg10[%c0_14, %c307] : memref<32x342xbf16, #tpu.memory_space<vmem>>, vector<32x35xbf16>
    tpu.vector_store %arg10[%c0_14, %c307], %26 {strides = array<i32>} : memref<32x342xbf16, #tpu.memory_space<vmem>>, vector<32x35xbf16>,
    %c0_15 = arith.constant 0 : index
    %c0_16 = arith.constant 0 : index
    %28 = vector.load %arg10[%c0_15, %c0_16] : memref<32x342xbf16, #tpu.memory_space<vmem>>, vector<32x342xbf16>
    %29 = vector.extract_strided_slice %28 {offsets = [0, 0], sizes = [32, 288], strides = [1, 1]} : vector<32x342xbf16> to vector<32x288xbf16>
    %30 = vector.extract_strided_slice %28 {offsets = [0, 1], sizes = [32, 288], strides = [1, 1]} : vector<32x342xbf16> to vector<32x288xbf16>
    %31 = vector.extract_strided_slice %28 {offsets = [0, 2], sizes = [32, 288], strides = [1, 1]} : vector<32x342xbf16> to vector<32x288xbf16>
    %32 = vector.extract_strided_slice %28 {offsets = [0, 18], sizes = [32, 288], strides = [1, 1]} : vector<32x342xbf16> to vector<32x288xbf16>
    %33 = vector.extract_strided_slice %28 {offsets = [0, 19], sizes = [32, 288], strides = [1, 1]} : vector<32x342xbf16> to vector<32x288xbf16>
    %34 = vector.extract_strided_slice %28 {offsets = [0, 20], sizes = [32, 288], strides = [1, 1]} : vector<32x342xbf16> to vector<32x288xbf16>
    %35 = vector.extract_strided_slice %28 {offsets = [0, 36], sizes = [32, 288], strides = [1, 1]} : vector<32x342xbf16> to vector<32x288xbf16>
    %36 = vector.extract_strided_slice %28 {offsets = [0, 37], sizes = [32, 288], strides = [1, 1]} : vector<32x342xbf16> to vector<32x288xbf16>
    %37 = vector.extract_strided_slice %28 {offsets = [0, 38], sizes = [32, 288], strides = [1, 1]} : vector<32x342xbf16> to vector<32x288xbf16>
    %38 = tpu.concatenate %29, %30, %31, %32, %33, %34, %35, %36, %37 in 0 : vector<32x288xbf16>, vector<32x288xbf16>, vector<32x288xbf16>, vector<32x288xbf16>, vector<32x288xbf16>, vector<32x288xbf16>, vector<32x288xbf16>, vector<32x288xbf16>, vector<32x288xbf16> -> vector<288x288xbf16>
    %c0_17 = arith.constant 0 : index
    %c0_18 = arith.constant 0 : index
    %39 = vector.load %arg5[%c0_17, %c0_18] : memref<32x288xbf16, #tpu.memory_space<vmem>>, vector<32x288xbf16>
    %cst_19 = arith.constant dense<0.000000e+00> : vector<32x288xf32>
    %40 = tpu.matmul %39, %38, %cst_19 {dimension_numbers = #tpu.dot_dimension_numbers<[1], [0], [0], [1], [0, 0, 1, 1], [], []>} : vector<32x288xbf16>, vector<288x288xbf16>, vector<32x288xf32> -> vector<32x288xf32>
    %c0_20 = arith.constant 0 : index
    %c0_21 = arith.constant 0 : index
    %41 = vector.load %arg6[%c0_20, %c0_21] : memref<32x1xf32, #tpu.memory_space<vmem>>, vector<32x1xf32>
    %42 = vector.broadcast %41 : vector<32x1xf32> to vector<32x288xf32>
    %43 = arith.addf %40, %42 : vector<32x288xf32>
    %cst_22 = arith.constant 0.000000e+00 : f32
    %44 = vector.broadcast %cst_22 : f32 to vector<32x288xf32>
    %45 = arith.maximumf %43, %44 : vector<32x288xf32>
    %c0_23 = arith.constant 0 : index
    %c0_24 = arith.constant 0 : index
    %46 = vector.load %arg7[%c0_23, %c0_24] : memref<5x32xbf16, #tpu.memory_space<vmem>>, vector<5x32xbf16>
    %47 = arith.truncf %45 : vector<32x288xf32> to vector<32x288xbf16>
    %cst_25 = arith.constant dense<0.000000e+00> : vector<5x288xf32>
    %48 = tpu.matmul %46, %47, %cst_25 {dimension_numbers = #tpu.dot_dimension_numbers<[1], [0], [0], [1], [0, 0, 1, 1], [], []>} : vector<5x32xbf16>, vector<32x288xbf16>, vector<5x288xf32> -> vector<5x288xf32>
    %c0_26 = arith.constant 0 : index
    %c0_27 = arith.constant 0 : index
    %49 = vector.load %arg8[%c0_26, %c0_27] : memref<5x1xf32, #tpu.memory_space<vmem>>, vector<5x1xf32>
    %50 = vector.broadcast %49 : vector<5x1xf32> to vector<5x288xf32>
    %51 = arith.addf %48, %50 : vector<5x288xf32>
    %c0_28 = arith.constant 0 : index
    %c0_29 = arith.constant 0 : index
    %c0_30 = arith.constant 0 : index
    %52 = vector.load %arg9[%c0_28, %c0_29, %c0_30] : memref<1x5x288xf32, #tpu.memory_space<vmem>>, vector<1x5x288xf32>
    %53 = vector.shape_cast %52 : vector<1x5x288xf32> to vector<5x288xf32>
    %54 = vector.shape_cast %51 : vector<5x288xf32> to vector<1x5x288xf32>
    tpu.vector_store %arg9[%c0_28, %c0_29, %c0_30], %54 {strides = array<i32>} : memref<1x5x288xf32, #tpu.memory_space<vmem>>, vector<1x5x288xf32>,
    return
  }
  func.func @transform_0(%arg0: i32) -> (i32, i32, i32) {
    %c0_i32 = arith.constant 0 : i32
    %c0_i32_0 = arith.constant 0 : i32
    %c0_i32_1 = arith.constant 0 : i32
    return %arg0, %c0_i32, %c0_i32_0 : i32, i32, i32
  }
  func.func @transform_1(%arg0: i32) -> (i32, i32) {
    %c0_i32 = arith.constant 0 : i32
    %c0_i32_0 = arith.constant 0 : i32
    %c0_i32_1 = arith.constant 0 : i32
    return %c0_i32, %c0_i32_0 : i32, i32
  }
  func.func @transform_2(%arg0: i32) -> (i32, i32) {
    %c0_i32 = arith.constant 0 : i32
    %c0_i32_0 = arith.constant 0 : i32
    %c0_i32_1 = arith.constant 0 : i32
    return %c0_i32, %c0_i32_0 : i32, i32
  }
  func.func @transform_3(%arg0: i32) -> (i32, i32) {
    %c0_i32 = arith.constant 0 : i32
    %c0_i32_0 = arith.constant 0 : i32
    %c0_i32_1 = arith.constant 0 : i32
    return %c0_i32, %c0_i32_0 : i32, i32
  }
  func.func @transform_4(%arg0: i32) -> (i32, i32) {
    %c0_i32 = arith.constant 0 : i32
    %c0_i32_0 = arith.constant 0 : i32
    %c0_i32_1 = arith.constant 0 : i32
    return %c0_i32, %c0_i32_0 : i32, i32
  }
  func.func @transform_5(%arg0: i32) -> (i32, i32) {
    %c0_i32 = arith.constant 0 : i32
    %c0_i32_0 = arith.constant 0 : i32
    %c0_i32_1 = arith.constant 0 : i32
    return %c0_i32, %c0_i32_0 : i32, i32
  }
  func.func @transform_6(%arg0: i32) -> (i32, i32) {
    %c0_i32 = arith.constant 0 : i32
    %c0_i32_0 = arith.constant 0 : i32
    %c0_i32_1 = arith.constant 0 : i32
    return %c0_i32, %c0_i32_0 : i32, i32
  }
  func.func @transform_7(%arg0: i32) -> (i32, i32) {
    %c0_i32 = arith.constant 0 : i32
    %c0_i32_0 = arith.constant 0 : i32
    %c0_i32_1 = arith.constant 0 : i32
    return %c0_i32, %c0_i32_0 : i32, i32
  }
  func.func @transform_8(%arg0: i32) -> (i32, i32, i32) {
    %c0_i32 = arith.constant 0 : i32
    %c0_i32_0 = arith.constant 0 : i32
    %c0_i32_1 = arith.constant 0 : i32
    return %arg0, %c0_i32, %c0_i32_0 : i32, i32, i32
  }
}

</mosaic_0001>

<bundles_post_ra>
// kernel: tpu_custom_call.1
= control target key start
LH: loop header
LB: loop body
LE: loop exit
PB: predicated region body
PF: predicated region fallthrough
CT: control target
= control target key end

     0   :  { %s1649_s27 = smov 0   ;;  %s2059_s0 = inlined_call_operand.vmem [shape: bf16[2,3,342], index: 0, kind: input, shape index: {}]   ;;  %s2060_s1 = inlined_call_operand.vmem [shape: f32[1,288], index: 1, kind: input, shape index: {}]   ;;  %s2061_s2 = inlined_call_operand.vmem [shape: bf16[32,27], index: 2, kind: input, shape index: {}]   ;;  %s2062_s3 = inlined_call_operand.vmem [shape: f32[32,1], index: 3, kind: input, shape index: {}]   ;;  %s2063_s4 = inlined_call_operand.vmem [shape: bf16[32,288], index: 4, kind: input, shape index: {}]   ;;  %s2064_s5 = inlined_call_operand.vmem [shape: f32[32,1], index: 5, kind: input, shape index: {}]   ;;  %s2065_s6 = inlined_call_operand.vmem [shape: bf16[5,32], index: 6, kind: input, shape index: {}]   ;;  %s2066_s7 = inlined_call_operand.vmem [shape: f32[5,1], index: 7, kind: input, shape index: {}]   ;;  %s2067_s8 = inlined_call_operand.vmem [shape: f32[2,5,288], index: 8, kind: output, shape index: {}]  }
   0x1 LB: > { %s1433_s28 = sadd.s32 4294967295, %s1588_s27   ;;  %p1437_p0 = scmp.ge.s32.totalorder %s1588_s27, 1  ;;  %s1588_s27 = sphi %s1649_s27, %s18_s27  }
   0x2   : > { %p262_p1 = scmp.lt.s32.totalorder %s1588_s27, 3 }
   0x4   : > { %p263_p2 = pnand %p1437_p0, %p262_p1 }
   0x5   : > { %p296_p3 = scmp.lt.s32.totalorder (!%p263_p2), %s1433_s28, 1  ;;  %v313_v0 = vlaneseq (!%p263_p2)  ;;  %v1590_v1 = vmov (!%p263_p2), 1983009808   ;;  %s1591_s11 = smov (!%p263_p2), 126   ;;  %v1730_v60 = vld [vmem:[%s2061_s2] sm:$0xff] (!%p263_p2)   ;;  %vm596_vm0 = vcmask (!%p263_p2), 220160  }
   0x6   : > { %266 = sbr.rel (%p263_p2) target bundleno = 1211 (0x4bb), region = 52  ;;  %v311_v2 = vunpack.c.l.s4 (!%p263_p2), %v1590_v1  ;;  %s1592_s12 = smov (!%p263_p2), 109   ;;  %1503 = vmatprep.mubr.msk.bf16.mxu1 (!%p263_p2), %vm596_vm0, %v1730_v60  ;;  %v1598_v62 = vmov (!%p263_p2), 0   ;;  %v562_v1 = vld [vmem:[%s2062_s3] sm:$0xff] (!%p263_p2)  ;;  %vm485_vm1 = vcmask (!%p263_p2), 1041408   ;;  %vm358_vm4 = vcmask (!%p263_p2), 1039360  }
   0x7   : > { %v1659_v3 = vshrl.u32 (!%p263_p2), %v313_v0, 7  ;;  %s1593_s13 = smov (!%p263_p2), 110   ;;  %s1594_s14 = smov (!%p263_p2), 127   ;;  %644 = vmatprep.mubr.bf16.mxu0 (!%p263_p2), %v1598_v62  ;;  %1568 = vset.pattern.permute.xlu0 (!%p263_p2), %v1598_v62  ;;  %v563_v0 = vld [vmem:[%s2062_s3 + $0x8] sm:$0xff] (!%p263_p2)  ;;  %vm486_vm2 = vsmask.f32 (!%p263_p2), 1280 }
   0x8   : > { %v312_v4 = vunpack.c.0.s8 (!%p263_p2), %v311_v2  ;;  %s1595_s15 = smov (!%p263_p2), 108   ;;  %s1596_s16 = smov (!%p263_p2), 92   ;;  %1569 = vset.pattern.permute.xlu1 (!%p263_p2), %v1598_v62  ;;  %v564_v2 = vld [vmem:[%s2062_s3 + $0x10] sm:$0xff] (!%p263_p2)  ;;  %vm1757_vm3 = vmand (!%p263_p2), %vm485_vm1, %vm486_vm2  ;;  %vm491_vm5 = vcmask (!%p263_p2), 1042432   ;;  %vm504_vm6 = vcmask (!%p263_p2), 1044480   ;;  %vm373_vm8 = vcmask (!%p263_p2), 1031168  }
   0x9   : > { %s1597_s17 = smov (!%p263_p2), 91   ;;  %s1599_s20 = smov (!%p263_p2), 90   ;;  %vm505_vm7 = vsmask.f32 (!%p263_p2), 4352  ;;  %vm391_vm9 = vcmask (!%p263_p2), 900096   ;;  %vm523_vm11 = vcmask (!%p263_p2), 1047552  }
   0xa   : > { %v315_v5 = vsub.s32 (!%p263_p2), %v312_v4, %v1659_v3  ;;  %v565_v4 = vld [vmem:[%s2062_s3 + $0x18] sm:$0xff] (!%p263_p2)  ;;  %vm1767_vm10 = vmand (!%p263_p2), %vm504_vm6, %vm505_vm7  ;;  %vm524_vm12 = vsmask.f32 (!%p263_p2), 7424  ;;  %vm413_vm13 = vcmask (!%p263_p2), 891904   ;;  %vm510_vm14 = vcmask (!%p263_p2), 1045504   ;;  %s1601_s21 = smov (!%p263_p2), 19  }
   0xb   : > { %vm434_vm15 = vcmask (!%p263_p2), 883712   ;;  %vm1783_vm1 = vmand (!%p263_p2), %vm523_vm11, %vm524_vm12  ;;  %vm451_vm2 = vcmask (!%p263_p2), 752640   ;;  %vm469_vm7 = vcmask (!%p263_p2), 744448   ;;  %vm482_vm11 = vcmask (!%p263_p2), 736256  }
   0xd   : > { %s2077_s28 = smov (!%p296_p3, %s1433_s28), 1 }
   0xe   : > { %s1539_s29 = smul.u32 6, %s2077_s28 }
  0x10   : > { %s300_s10 = scalar_lea.vmem %s2059_s0, %s1539_s29 }
  0x11   : > { %v307_v6 = vld [vmem:[%s300_s10] sm:$0x3f] }
  0x12   : > { %v1666_v7 = vrot.slane %v307_v6, %v315_v5  ;;  %v309_v8 = vcombine.high %v307_v6, %v307_v6  ;;  %v397_v9 = vcombine.low %v307_v6, %v307_v6 }
  0x14   : > { %v364_v10 = vrot.slane %v1666_v7, 5  ;;  %v1669_v11 = vrot.slane %v309_v8, %v315_v5  ;;  %v1672_v12 = vshrl.u32 %v1666_v7, 16  ;;  %v1675_v13 = vshll.u32 %v1666_v7, 16 }
  0x15   : > { %v1679_v14 = vcombine.high %v1666_v7, %v1666_v7  ;;  %v404_v16 = vrot.slane %v397_v9, %v315_v5  ;;  %v406_v42 = vcombine.low %v1666_v7, %v1666_v7  ;;  %v442_v50 = vrot.slane %v1666_v7, 7 }
  0x16   : > { %367 = vrot.lane.b32.xlu1 %v364_v10, %s1591_s11  ;;  %v366_v15 = vrot.slane %v1669_v11, 5  ;;  %v376_v17 = vrot.slane %v1672_v12, 3  ;;  %v377_v18 = vrot.slane %v1675_v13, 4  ;;  %v345_v21 = vshrl.u32 %v1669_v11, 16 }
  0x17   : > { %v1686_v19 = vshrl.u32 %v1679_v14, 16  ;;  %v340_v20 = vshll.u32 %v1679_v14, 16  ;;  %v348_v22 = vshll.u32 %v1669_v11, 16  ;;  %v365_v26 = vrot.slane %v1679_v14, 5 }
  0x18   : > { %371 = vrot.lane.b32.xlu0 %v366_v15, %s1591_s11  ;;  %v378_v23 = vor.u32 %v377_v18, %v376_v17  ;;  %v331_v27 = vrot.slane %v1672_v12, 6  ;;  %v334_v28 = vrot.slane %v1675_v13, 7  ;;  %v347_v30 = vrot.slane %v345_v21, 6 }
  0x19   : > { %v339_v24 = vrot.slane %v1686_v19, 6  ;;  %v342_v25 = vrot.slane %v340_v20, 7  ;;  %v350_v31 = vrot.slane %v348_v22, 7  ;;  %v382_v33 = vrot.slane %v345_v21, 3 }
  0x1a   : > { %409 = vrot.lane.b32.xlu1 %v404_v16, %s1592_s12  ;;  %v335_v32 = vor.u32 %v334_v28, %v331_v27  ;;  %v383_v34 = vrot.slane %v348_v22, 4  ;;  %v379_v36 = vrot.slane %v1686_v19, 3  ;;  %v380_v37 = vrot.slane %v340_v20, 4 }
  0x1b   : > { %v343_v29 = vor.u32 %v342_v25, %v339_v24  ;;  %v351_v35 = vor.u32 %v350_v31, %v347_v30  ;;  %v405_v40 = vcombine.low %v404_v16, %v404_v16  ;;  %v417_v41 = vrot.slane %v340_v20, 1 }
  0x1c   : > { %385 = vrot.lane.b32.xlu0 %v378_v23, %s1593_s13  ;;  %v384_v38 = vor.u32 %v383_v34, %v382_v33  ;;  %v381_v39 = vor.u32 %v380_v37, %v379_v36  ;;  %v418_v43 = vrot.slane %v348_v22, 1  ;;  %v443_v46 = vrot.slane %v1679_v14, 7 }
  0x1d   : > { %v420_v44 = vor.u32 %v417_v41, %v1686_v19  ;;  %v416_v48 = vrot.slane %v1675_v13, 1  ;;  %v444_v49 = vrot.slane %v1669_v11, 7  ;;  %v460_v51 = vrot.slane %v345_v21, 5 }
  0x1e   : > { %369 = vrot.lane.b32.xlu1 %v365_v26, %s1591_s11  ;;  %v1563_v45 = vpack.i.bf16 %v418_v43, %v417_v41  ;;  %v421_v47 = vor.u32 %v418_v43, %v345_v21  ;;  %v461_v52 = vrot.slane %v348_v22, 6  ;;  %v457_v54 = vrot.slane %v1686_v19, 5 }
  0x1f   : > { %v419_v53 = vor.u32 %v416_v48, %v1672_v12  ;;  %v458_v55 = vrot.slane %v340_v20, 6  ;;  %v454_v58 = vrot.slane %v1672_v12, 5  ;;  %v455_v59 = vrot.slane %v1675_v13, 6 }
  0x20   : > { %354 = vrot.lane.b32.xlu0 %v343_v29, %s1594_s14  ;;  %v462_v56 = vor.u32 %v461_v52, %v460_v51  ;;  %v475_v63 = vcombine.low %v1669_v11, %v1669_v11 }
  0x21   : > { %v459_v57 = vor.u32 %v458_v55, %v457_v54  ;;  %v456_v61 = vor.u32 %v455_v59, %v454_v58 }
  0x22   : > { %352 = vrot.lane.b32.xlu1 %v335_v32, %s1594_s14 }
  0x24   : > { %356 = vrot.lane.b32.xlu0 %v351_v35, %s1594_s14 }
  0x26   : > { %389 = vrot.lane.b32.xlu1 %v384_v38, %s1593_s13 }
  0x28   : > { %387 = vrot.lane.b32.xlu0 %v381_v39, %s1593_s13 }
  0x2a   : > { %407 = vrot.lane.b32.xlu1 %v405_v40, %s1592_s12 }
  0x2c   : > { %411 = vrot.lane.b32.xlu0 %v406_v42, %s1592_s12 }
  0x2e   : > { %430 = vrot.lane.b32.xlu1 %v420_v44, %s1595_s15 }
  0x30   : > { %1564 = vrot.lane.b32.xlu0 %v1563_v45, %s1595_s15 }
  0x32   : > { %447 = vrot.lane.b32.xlu1 %v443_v46, %s1596_s16 }
  0x34   : > { %432 = vrot.lane.b32.xlu0 %v421_v47, %s1595_s15 }
  0x36   : > { %422 = vrot.lane.b32.xlu1 %v416_v48, %s1595_s15 }
  0x38   : > { %449 = vrot.lane.b32.xlu0 %v444_v49, %s1596_s16 }
  0x3a   : > { %445 = vrot.lane.b32.xlu1 %v442_v50, %s1596_s16 }
  0x3c   : > { %428 = vrot.lane.b32.xlu0 %v419_v53, %s1595_s15 }
  0x3e   : > { %467 = vrot.lane.b32.xlu1 %v462_v56, %s1597_s17 }
  0x40   : > { %465 = vrot.lane.b32.xlu0 %v459_v57, %s1597_s17 }
  0x42   : > { %478 = vrot.lane.b32.xlu1 %v1666_v7, %s1599_s20 }
  0x44   : > { %463 = vrot.lane.b32.xlu0 %v456_v61, %s1597_s17 }
  0x46   : > { %476 = vrot.lane.b32.xlu1 %v406_v42, %s1599_s20 }
  0x48   : > { %480 = vrot.lane.b32.xlu0 %v475_v63, %s1599_s20  ;;  %v1600_v63 = vmov 65535  }
  0x4a   : > { %573 = vperm.xlu1 %1569, %v563_v0   ;;  %v604_v0 = vsel %vm504_vm6, 4294967295, %v1600_v63  ;;  %vm796_vm6 = vcmask 416768  }
  0x4c   : > { %568 = vperm.xlu0 %1568, %v562_v1  }
  0x4e   : > { %578 = vperm.xlu1 %1569, %v564_v2  }
  0x50   : > { %583 = vperm.xlu0 %1568, %v565_v4  }
  0x88   : > { %v368_v5 = vpop.permute.xlu1 %367 }
  0x8a   : > { %v372_v6 = vpop.permute.xlu0 %371 }
  0x8c   : > { %v410_v8 = vpop.permute.xlu1 %409 }
  0x8e   : > { %v386_v9 = vpop.permute.xlu0 %385 }
  0x90   : > { %v370_v10 = vpop.permute.xlu1 %369 }
  0x91   : > { %v375_v28 = vsel %vm373_vm8, %v370_v10, %v372_v6  ;;  %v374_v37 = vsel %vm373_vm8, %v368_v5, %v370_v10 }
  0x92   : > { %v355_v12 = vpop.permute.xlu0 %354 }
  0x94   : > { %v353_v13 = vpop.permute.xlu1 %352 }
  0x95   : > { %v359_v23 = vsel %vm358_vm4, %v353_v13, %v355_v12 }
  0x96   : > { %v357_v15 = vpop.permute.xlu0 %356  ;;  %v488_v29 = vsel %vm1757_vm3, %v1666_v7, %v359_v23 }
  0x97   : > { %v490_v19 = vsel %vm1757_vm3, %v1669_v11, %v357_v15  ;;  %v360_v21 = vsel %vm358_vm4, %v355_v12, %v357_v15  ;;  %v494_v40 = vsel %vm491_vm5, %v488_v29, %v374_v37  ;;  %v605_v15 = vsel %vm510_vm14, %v604_v0, 0 }
  0x98   : > { %v390_v16 = vpop.permute.xlu1 %389  ;;  %v502_v25 = vsel %vm491_vm5, %v490_v19, %v372_v6  ;;  %v489_v11 = vsel %vm1757_vm3, %v1679_v14, %v360_v21  ;;  %vm543_vm3 = vsmask.f32 2304  ;;  %v738_v29 = vsub.s32 2, %v1659_v3 }
  0x99   : > { %v509_v30 = vsel %vm1767_vm10, %v502_v25, %v390_v16  ;;  %v498_v33 = vsel %vm491_vm5, %v489_v11, %v375_v28  ;;  %vm1813_vm12 = vmand %vm491_vm5, %vm543_vm3  ;;  %vm755_vm5 = vcmask 154624  }
  0x9a   : > { %v388_v18 = vpop.permute.xlu0 %387  ;;  %756 = vst.msk [vmem:[#allocation2] sm:$0xff] %vm755_vm5, %v1598_v62  ;;  %757 = vst.msk [vmem:[#allocation2 + $0x18] sm:$0xff] %vm755_vm5, %v1598_v62 }
  0x9b   : > { %v393_v27 = vsel %vm391_vm9, %v388_v18, %v390_v16  ;;  %v392_v34 = vsel %vm391_vm9, %v386_v9, %v388_v18 }
  0x9c   : > { %v408_v20 = vpop.permute.xlu1 %407  ;;  %v508_v7 = vsel %vm1767_vm10, %v498_v33, %v393_v27  ;;  %v507_v44 = vsel %vm1767_vm10, %v494_v40, %v392_v34  ;;  %vm529_vm10 = vcmask 1040384  }
  0x9d   : > { %v414_v45 = vsel %vm413_vm13, %v408_v20, %v410_v8 }
  0x9e   : > { %v412_v22 = vpop.permute.xlu0 %411  ;;  %v513_v50 = vsel %vm510_vm14, %v507_v44, %v414_v45 }
  0x9f   : > { %v415_v31 = vsel %vm413_vm13, %v410_v8, %v412_v22  ;;  %v521_v38 = vsel %vm510_vm14, %v509_v30, %v412_v22  ;;  %v730_v30 = vsub.s32 0, %v1659_v3 }
  0xa0   : > { %v431_v26 = vpop.permute.xlu1 %430  ;;  %v517_v43 = vsel %vm510_vm14, %v508_v7, %v415_v31  ;;  %vm801_vm14 = vcmask 703896  }
  0xa2   : > { %v1565_v32 = vpop.permute.xlu0 %1564 }
  0xa3   : > { %v1567_v35 = vunpack.i.h.bf16 %v1565_v32  ;;  %v1566_v36 = vunpack.i.l.bf16 %v1565_v32  ;;  %v734_v32 = vsub.s32 1, %v1659_v3 }
  0xa4   : > { %v448_v39 = vpop.permute.xlu1 %447 }
  0xa5   : > { %v528_v41 = vsel %vm1783_vm1, %v521_v38, %v1567_v35  ;;  %v436_v42 = vsel %vm434_vm15, %v1566_v36, %v1567_v35 }
  0xa6   : > { %v433_v46 = vpop.permute.xlu0 %432  ;;  %1499 = vmatprep.subr.bf16.mxu1 %v528_v41  ;;  %v527_v47 = vsel %vm1783_vm1, %v517_v43, %v436_v42 }
  0xa7   : > { %612 = vmatprep.subr.bf16.mxu0 %v527_v47  ;;  %1500 = vmatpush3.bf16.msra.mxu1 %v528_v41  ;;  %v438_v10 = vsel %vm434_vm15, %v431_v26, %v433_v46 }
  0xa8   : > { %v423_v48 = vpop.permute.xlu1 %422 }
  0xa9   : > { %v435_v49 = vsel %vm434_vm15, %v423_v48, %v1566_v36 }
  0xaa   : > { %v450_v51 = vpop.permute.xlu0 %449  ;;  %v526_v52 = vsel %vm1783_vm1, %v513_v50, %v435_v49  ;;  %vm548_vm1 = vcmask 1043456  }
  0xab   : > { %613 = vmatpush1.bf16.msra.mxu0 %v526_v52  ;;  %v453_v1 = vsel %vm451_vm2, %v448_v39, %v450_v51  ;;  %v540_v12 = vsel %vm529_vm10, %v433_v46, %v450_v51 }
  0xac   : > { %v446_v53 = vpop.permute.xlu1 %445  ;;  %v536_v16 = vsel %vm529_vm10, %v438_v10, %v453_v1 }
  0xad   : > { %v452_v59 = vsel %vm451_vm2, %v446_v53, %v448_v39 }
  0xae   : > { %v429_v54 = vpop.permute.xlu0 %428 }
  0xaf   : > { %v437_v57 = vsel %vm434_vm15, %v429_v54, %v431_v26  ;;  %v1573_v26 = vld [vmem:[%s2061_s2 + $0x8] sm:$0xff]  }
  0xb0   : > { %v468_v55 = vpop.permute.xlu1 %467  ;;  %v532_v2 = vsel %vm529_vm10, %v437_v57, %v452_v59 }
  0xb1   : > { %v547_v17 = vsel %vm1813_vm12, %v540_v12, %v468_v55 }
  0xb2   : > { %v466_v56 = vpop.permute.xlu0 %465 }
  0xb3   : > { %v471_v6 = vsel %vm469_vm7, %v466_v56, %v468_v55 }
  0xb4   : > { %v479_v58 = vpop.permute.xlu1 %478  ;;  %v546_v19 = vsel %vm1813_vm12, %v536_v16, %v471_v6 }
  0xb6   : > { %v464_v61 = vpop.permute.xlu0 %463 }
  0xb7   : > { %v470_v5 = vsel %vm469_vm7, %v464_v61, %v466_v56 }
  0xb8   : > { %v545_v8 = vsel %vm1813_vm12, %v532_v2, %v470_v5  ;;  %v477_v9 = vpop.permute.xlu1 %476 }
  0xb9   : > { %v483_v13 = vsel %vm482_vm11, %v477_v9, %v479_v58 }
  0xba   : > { %v481_v18 = vpop.permute.xlu0 %480  ;;  %v551_v20 = vsel %vm548_vm1, %v545_v8, %v483_v13 }
  0xbb   : > { %v484_v21 = vsel %vm482_vm11, %v479_v58, %v481_v18  ;;  %v557_v22 = vsel %vm548_vm1, %v547_v17, %v481_v18  ;;  %v606_v11 = vand.u32 %v605_v15, %v551_v20 }
  0xbc   : > { %v554_v23 = vsel %vm548_vm1, %v546_v19, %v484_v21  ;;  %v610_v24 = vand.u32 %v605_v15, %v557_v22 }
  0xbd   : > { %v608_v25 = vand.u32 %v605_v15, %v554_v23 }
  0xbe   : > { %1501 = vmatprep.subr.bf16.mxu1 %v610_v24 }
  0xbf   : > { %614 = vmatprep.subr.bf16.mxu0 %v608_v25  ;;  %1502 = vmatpush3.bf16.msra.mxu1 %v610_v24 }
  0xc0   : > { %615 = vmatpush1.bf16.msra.mxu0 %v606_v11 }
  0xc2   : > { %1504 = vmatmul.mubr.msk.bf16.vlgmr.msra.gmra.mrb[0].mxu1 %vm596_vm0, %v1573_v26 }
  0xc3   : > { %1442 = vmatmul.mubr.msk.bf16.vlgmr.msra.gmra.mrb[0].mxu0 %vm596_vm0, %v1730_v60  ;;  %1146 = vmatprep.mubr.bf16.mxu1 %v1598_v62  ;;  %v726_v60 = vld [vmem:[%s2060_s1] sm:$0x7] }
  0xc4   : > { %654 = vmatprep.mubr.bf16.mxu0 %v1598_v62  ;;  %v739_v36 = vrot.slane %v726_v60, %v738_v29  ;;  %v731_v38 = vrot.slane %v726_v60, %v730_v30  ;;  %v735_v43 = vrot.slane %v726_v60, %v734_v32 }
  0xc9   : > { %v574_v27 = vpop.permute.xlu1 %573 }
  0xcb   : > { %1443 = vmatmul.mubr.msk.bf16.gmra.mrb[4].mxu0 %vm596_vm0, %v1573_v26  ;;  %v569_v28 = vpop.permute.xlu0 %568  ;;  %vm793_vm0 = vcmask 1047704  }
  0xcd   : > { %v579_v31 = vpop.permute.xlu1 %578 }
  0xcf   : > { %v584_v33 = vpop.permute.xlu0 %583 }
 0x195   : > { %v1505_v14 = vpop.f32.mrb[0].mxu1 }
 0x196   : > { %v646_v34 = vpop.f32.mrb[0].mxu0  ;;  %v699_v35 = vpop.f32.mrb[1].mxu1  ;;  %v708_v37 = vadd.f32 %v1505_v14, %v579_v31 }
 0x197   : > { %v647_v7 = vadd.f32 %v646_v34, %v569_v28  ;;  %v700_v39 = vadd.f32 %v699_v35, %v569_v28  ;;  %v648_v40 = vpop.f32.mrb[1].mxu0  ;;  %v1506_v41 = vpop.f32.mrb[2].mxu1 }
 0x198   : > { %v649_v42 = vadd.f32 %v648_v40, %v569_v28  ;;  %v722_v44 = vmax.f32 %v708_v37, 0.0  ;;  %v711_v45 = vadd.f32 %v1506_v41, %v584_v33  ;;  %v650_v46 = vpop.f32.mrb[2].mxu0  ;;  %v702_v47 = vpop.f32.mrb[3].mxu1  ;;  %v1921_v40 = vld [vmem:[%s2063_s4 + $0x4] ss:$12 sps:$4 sm:$0xff]  }
 0x199   : > { %v714_v48 = vmax.f32 %v647_v7, 0.0  ;;  %v716_v49 = vmax.f32 %v700_v39, 0.0  ;;  %v651_v3 = vadd.f32 %v650_v46, %v574_v27  ;;  %v703_v50 = vadd.f32 %v702_v47, %v574_v27  ;;  %v652_v51 = vpop.f32.mrb[3].mxu0  ;;  %1093 = vmatprep.mubr.bf16.mxu0 %v1921_v40  ;;  %v1000_v41 = vld [vmem:[%s2064_s5] sm:$0xff] }
 0x19a   : > { %v715_v52 = vmax.f32 %v649_v42, 0.0  ;;  %v725_v53 = vmax.f32 %v711_v45, 0.0  ;;  %v653_v54 = vadd.f32 %v652_v51, %v574_v27  ;;  %v751_v55 = vmul.f32 %v739_v36, %v722_v44  ;;  %v1001_v42 = vld [vmem:[%s2064_s5 + $0x8] sm:$0xff]  ;;  %v1003_v44 = vld [vmem:[%s2064_s5 + $0x18] sm:$0xff]  ;;  %v1284_v45 = vld [vmem:[%s2066_s7] sm:$0x1f] }
 0x19b   : > { %v745_v56 = vmul.f32 %v739_v36, %v716_v49  ;;  %v717_v57 = vmax.f32 %v651_v3, 0.0  ;;  %v719_v58 = vmax.f32 %v703_v50, 0.0  ;;  %v743_v63 = vmul.f32 %v731_v38, %v714_v48 }
 0x19c   : > { %v718_v59 = vmax.f32 %v653_v54, 0.0  ;;  %v754_v61 = vmul.f32 %v739_v36, %v725_v53  ;;  %v744_v2 = vmul.f32 %v735_v43, %v715_v52 }
 0x19d   : > { %v746_v0 = vmul.f32 %v731_v38, %v717_v57  ;;  %v748_v1 = vmul.f32 %v739_v36, %v719_v58 }
 0x19e   : > { %v747_v4 = vmul.f32 %v735_v43, %v718_v59  ;;  %v656_v5 = vpop.f32.mrb[4].mxu0  ;;  %v763_v6 = vpack.c.bf16 %v754_v61, %v751_v55 }
 0x19f   : > { %v657_v8 = vadd.f32 %v656_v5, %v579_v31  ;;  %v658_v9 = vpop.f32.mrb[5].mxu0  ;;  %v760_v10 = vpack.c.bf16 %v748_v1, %v745_v56  ;;  %v758_v12 = vpack.c.bf16 %v746_v0, %v743_v63 }
 0x1a0   : > { %v659_v13 = vadd.f32 %v658_v9, %v579_v31  ;;  %v660_v15 = vpop.f32.mrb[6].mxu0  ;;  %v759_v16 = vpack.c.bf16 %v747_v4, %v744_v2 }
 0x1a1   : > { %v720_v17 = vmax.f32 %v657_v8, 0.0  ;;  %v661_v18 = vadd.f32 %v660_v15, %v584_v33  ;;  %774 = vrot.lane.b32.xlu0 %v760_v10, %s1601_s21  ;;  %v662_v19 = vpop.f32.mrb[7].mxu0  ;;  %770 = vrot.lane.b32.xlu1 %v758_v12, %s1601_s21 }
 0x1a2   : > { %v721_v20 = vmax.f32 %v659_v13, 0.0  ;;  %v663_v21 = vadd.f32 %v662_v19, %v584_v33 }
 0x1a3   : > { %v723_v22 = vmax.f32 %v661_v18, 0.0  ;;  %v749_v24 = vmul.f32 %v731_v38, %v720_v17 }
 0x1a4   : > { %v724_v23 = vmax.f32 %v663_v21, 0.0  ;;  %v750_v11 = vmul.f32 %v735_v43, %v721_v20 }
 0x1a5   : > { %v752_v25 = vmul.f32 %v731_v38, %v723_v22  ;;  %772 = vrot.lane.b32.xlu1 %v759_v16, %s1601_s21 }
 0x1a6   : > { %v753_v26 = vmul.f32 %v735_v43, %v724_v23  ;;  %v1002_v43 = vld [vmem:[%s2064_s5 + $0x10] sm:$0xff] }
 0x1a7   : > { %v761_v27 = vpack.c.bf16 %v752_v25, %v749_v24 }
 0x1a8   : > { %v762_v28 = vpack.c.bf16 %v753_v26, %v750_v11 }
 0x1a9   : > { %780 = vrot.lane.b32.xlu1 %v763_v6, %s1601_s21 }
 0x1aa   : > { %778 = vrot.lane.b32.xlu0 %v762_v28, %s1601_s21  ;;  %v1986_v28 = vld [vmem:[%s2063_s4 + $0x8] ss:$12 sps:$4 sm:$0xff]  }
 0x1ae   : > { %776 = vrot.lane.b32.xlu0 %v761_v27, %s1601_s21 }
 0x213   : > { %v771_v29 = vpop.permute.xlu1 %770  ;;  %v775_v30 = vpop.permute.xlu0 %774 }
 0x214   : > { %794 = vst.msk [vmem:[#allocation2] sm:$0xff] %vm793_vm0, %v771_v29 }
 0x217   : > { %v773_v31 = vpop.permute.xlu1 %772 }
 0x218   : > { %v783_v60 = vsel %vm755_vm5, %v771_v29, %v773_v31  ;;  %v784_v32 = vsel %vm755_vm5, %v773_v31, %v775_v30 }
 0x219   : > { %797 = vst.msk [vmem:[#allocation2 + $0x10] sm:$0xff] %vm796_vm6, %v784_v32  ;;  %1061 = vmatprep.subr.bf16.mxu0 %v783_v60 }
 0x21a   : > { %802 = vst.msk [vmem:[#allocation2 + $0x10] sm:$0xff] %vm801_vm14, %v1598_v62 }
 0x21b   : > { %v781_v14 = vpop.permute.xlu1 %780  ;;  %v804_v33 = vld [vmem:[#allocation2] sm:$0xff] }
 0x21c   : > { %v779_v34 = vpop.permute.xlu0 %778  ;;  %860 = vrot.lane.b32.xlu0 %v804_v33, %s1593_s13  ;;  %816 = vrot.lane.b32.xlu1 %v804_v33, %s1594_s14 }
 0x21d   : > { %v786_v35 = vsel %vm755_vm5, %v779_v34, %v781_v14  ;;  %1062 = vmatpush1.bf16.msra.mxu0 %v804_v33 }
 0x21e   : > { %800 = vst.msk [vmem:[#allocation2 + $0x28] sm:$0xff] %vm796_vm6, %v786_v35  ;;  %v2002_v35 = vld [vmem:[%s2063_s4 + $0x20] ss:$12 sps:$4 sm:$0xff]  }
 0x21f   : > { %803 = vst.msk [vmem:[#allocation2 + $0x28] sm:$0xff] %vm801_vm14, %v1598_v62 }
 0x220   : > { %v777_v36 = vpop.permute.xlu0 %776  ;;  %838 = vrot.lane.b32.xlu1 %v804_v33, %s1591_s11 }
 0x221   : > { %v785_v37 = vsel %vm755_vm5, %v777_v36, %v779_v34  ;;  %798 = vst.msk [vmem:[#allocation2 + $0x18] sm:$0xff] %vm793_vm0, %v777_v36  ;;  %v1863_v7 = vld [vmem:[#allocation2 + $0x10] sm:$0xff] }
 0x222   : > { %820 = vrot.lane.b32.xlu0 %v1863_v7, %s1594_s14  ;;  %1063 = vmatprep.subr.bf16.mxu0 %v785_v37 }
 0x224   : > { %970 = vrot.lane.b32.xlu1 %v804_v33, %s1599_s20 }
 0x226   : > { %842 = vrot.lane.b32.xlu0 %v1863_v7, %s1591_s11  ;;  %v1888_v39 = vld [vmem:[#allocation2 + $0x28] sm:$0xff] }
 0x228   : > { %818 = vrot.lane.b32.xlu1 %v783_v60, %s1594_s14  ;;  %v807_v38 = vld [vmem:[#allocation2 + $0x18] sm:$0xff] }
 0x229   : > { %1064 = vmatpush1.bf16.msra.mxu0 %v807_v38 }
 0x22a   : > { %974 = vrot.lane.b32.xlu0 %v1863_v7, %s1599_s20 }
 0x22c   : > { %840 = vrot.lane.b32.xlu1 %v783_v60, %s1591_s11 }
 0x22e   : > { %864 = vrot.lane.b32.xlu0 %v1863_v7, %s1593_s13 }
 0x230   : > { %972 = vrot.lane.b32.xlu1 %v783_v60, %s1599_s20 }
 0x232   : > { %886 = vrot.lane.b32.xlu0 %v1863_v7, %s1592_s12 }
 0x234   : > { %862 = vrot.lane.b32.xlu1 %v783_v60, %s1593_s13 }
 0x236   : > { %822 = vrot.lane.b32.xlu0 %v807_v38, %s1594_s14 }
 0x238   : > { %884 = vrot.lane.b32.xlu1 %v783_v60, %s1592_s12 }
 0x23a   : > { %844 = vrot.lane.b32.xlu0 %v807_v38, %s1591_s11 }
 0x23c   : > { %976 = vrot.lane.b32.xlu1 %v807_v38, %s1599_s20 }
 0x23e   : > { %866 = vrot.lane.b32.xlu0 %v807_v38, %s1593_s13 }
 0x240   : > { %978 = vrot.lane.b32.xlu1 %v785_v37, %s1599_s20 }
 0x242   : > { %824 = vrot.lane.b32.xlu0 %v785_v37, %s1594_s14 }
 0x244   : > { %868 = vrot.lane.b32.xlu1 %v785_v37, %s1593_s13 }
 0x246   : > { %846 = vrot.lane.b32.xlu0 %v785_v37, %s1591_s11 }
 0x248   : > { %826 = vrot.lane.b32.xlu1 %v1888_v39, %s1594_s14 }
 0x24a   : > { %890 = vrot.lane.b32.xlu0 %v785_v37, %s1592_s12 }
 0x24c   : > { %882 = vrot.lane.b32.xlu1 %v804_v33, %s1592_s12 }
 0x24e   : > { %888 = vrot.lane.b32.xlu0 %v807_v38, %s1592_s12 }
 0x250   : > { %848 = vrot.lane.b32.xlu1 %v1888_v39, %s1591_s11 }
 0x252   : > { %980 = vrot.lane.b32.xlu0 %v1888_v39, %s1599_s20 }
 0x254   : > { %906 = vrot.lane.b32.xlu1 %v783_v60, %s1595_s15 }
 0x256   : > { %870 = vrot.lane.b32.xlu0 %v1888_v39, %s1593_s13 }
 0x258   : > { %904 = vrot.lane.b32.xlu1 %v804_v33, %s1595_s15 }
 0x25a   : > { %908 = vrot.lane.b32.xlu0 %v1863_v7, %s1595_s15 }
 0x25c   : > { %928 = vrot.lane.b32.xlu1 %v783_v60, %s1596_s16 }
 0x25e   : > { %912 = vrot.lane.b32.xlu0 %v785_v37, %s1595_s15 }
 0x260   : > { %892 = vrot.lane.b32.xlu1 %v1888_v39, %s1592_s12 }
 0x262   : > { %910 = vrot.lane.b32.xlu0 %v807_v38, %s1595_s15 }
 0x264   : > { %926 = vrot.lane.b32.xlu1 %v804_v33, %s1596_s16 }
 0x266   : > { %930 = vrot.lane.b32.xlu0 %v1863_v7, %s1596_s16 }
 0x268   : > { %914 = vrot.lane.b32.xlu1 %v1888_v39, %s1595_s15  ;;  %s1540_s15 = smul.u32 24, %s2077_s28 }
 0x26a   : > { %934 = vrot.lane.b32.xlu0 %v785_v37, %s1596_s16  ;;  %s305_s22 = scalar_lea.vmem %s2067_s8, %s1540_s15 }
 0x26c   : > { %950 = vrot.lane.b32.xlu1 %v783_v60, %s1597_s17 }
 0x26e   : > { %932 = vrot.lane.b32.xlu0 %v807_v38, %s1596_s16 }
 0x270   : > { %936 = vrot.lane.b32.xlu1 %v1888_v39, %s1596_s16 }
 0x272   : > { %952 = vrot.lane.b32.xlu0 %v1863_v7, %s1597_s17 }
 0x274   : > { %948 = vrot.lane.b32.xlu1 %v804_v33, %s1597_s17 }
 0x276   : > { %956 = vrot.lane.b32.xlu0 %v785_v37, %s1597_s17 }
 0x278   : > { %958 = vrot.lane.b32.xlu1 %v1888_v39, %s1597_s17 }
 0x27a   : > { %954 = vrot.lane.b32.xlu0 %v807_v38, %s1597_s17 }
 0x27c   : > { %1006 = vperm.xlu1 %1569, %v1000_v41  }
 0x27e   : > { %1011 = vperm.xlu0 %1568, %v1001_v42  }
 0x280   : > { %1016 = vperm.xlu1 %1569, %v1002_v43  }
 0x282   : > { %1021 = vperm.xlu0 %1568, %v1003_v44  }
 0x284   : > { %1287 = vperm.xlu1 %1569, %v1284_v45  }
 0x28e   : > { %v817_v46 = vpop.permute.xlu1 %816  ;;  %v861_v47 = vpop.permute.xlu0 %860 }
 0x292   : > { %v839_v48 = vpop.permute.xlu1 %838 }
 0x294   : > { %v1949_v49 = vpop.permute.xlu0 %820 }
 0x296   : > { %v971_v3 = vpop.permute.xlu1 %970 }
 0x298   : > { %v1951_v50 = vpop.permute.xlu0 %842 }
 0x29a   : > { %v819_v51 = vpop.permute.xlu1 %818 }
 0x29b   : > { %v828_v52 = vsel %vm358_vm4, %v817_v46, %v819_v51  ;;  %v829_v53 = vsel %vm358_vm4, %v819_v51, %v1949_v49 }
 0x29c   : > { %v1956_v54 = vpop.permute.xlu0 %974  ;;  %1065 = vmatprep.subr.bf16.mxu0 %v829_v53 }
 0x29d   : > { %1066 = vmatpush1.bf16.msra.mxu0 %v828_v52 }
 0x29e   : > { %v841_v55 = vpop.permute.xlu1 %840 }
 0x29f   : > { %v851_v17 = vsel %vm373_vm8, %v841_v55, %v1951_v50  ;;  %v850_v19 = vsel %vm373_vm8, %v839_v48, %v841_v55 }
 0x2a0   : > { %v1958_v56 = vpop.permute.xlu0 %864 }
 0x2a2   : > { %v973_v57 = vpop.permute.xlu1 %972 }
 0x2a3   : > { %v982_v58 = vsel %vm482_vm11, %v971_v3, %v973_v57  ;;  %v983_v59 = vsel %vm482_vm11, %v973_v57, %v1956_v54 }
 0x2a4   : > { %v887_v61 = vpop.permute.xlu0 %886  ;;  %1114 = vmatprep.subr.bf16.mxu1 %v983_v59 }
 0x2a5   : > { %1115 = vmatpush1.bf16.msra.mxu1 %v982_v58 }
 0x2a6   : > { %v863_v63 = vpop.permute.xlu1 %862 }
 0x2a7   : > { %v873_v25 = vsel %vm391_vm9, %v863_v63, %v1958_v56  ;;  %v872_v29 = vsel %vm391_vm9, %v861_v47, %v863_v63 }
 0x2a8   : > { %v823_v0 = vpop.permute.xlu0 %822 }
 0x2aa   : > { %v885_v1 = vpop.permute.xlu1 %884 }
 0x2ab   : > { %v895_v33 = vsel %vm413_vm13, %v885_v1, %v887_v61 }
 0x2ac   : > { %v845_v2 = vpop.permute.xlu0 %844 }
 0x2ae   : > { %v977_v4 = vpop.permute.xlu1 %976 }
 0x2b0   : > { %v867_v5 = vpop.permute.xlu0 %866 }
 0x2b2   : > { %v979_v6 = vpop.permute.xlu1 %978 }
 0x2b3   : > { %v984_v26 = vsel %vm482_vm11, %v977_v4, %v979_v6 }
 0x2b4   : > { %v825_v8 = vpop.permute.xlu0 %824 }
 0x2b5   : > { %v830_v15 = vsel %vm358_vm4, %v823_v0, %v825_v8 }
 0x2b6   : > { %v869_v9 = vpop.permute.xlu1 %868 }
 0x2b7   : > { %v874_v32 = vsel %vm391_vm9, %v867_v5, %v869_v9  ;;  %v1579_v5 = vld [vmem:[%s2063_s4 + $0x1c] ss:$12 sps:$4 sm:$0xff]  }
 0x2b8   : > { %v847_v10 = vpop.permute.xlu0 %846 }
 0x2b9   : > { %v852_v23 = vsel %vm373_vm8, %v845_v2, %v847_v10  ;;  %v1576_v2 = vld [vmem:[%s2063_s4] ss:$12 sps:$4 sm:$0xff]  }
 0x2ba   : > { %v1963_v12 = vpop.permute.xlu1 %826 }
 0x2bb   : > { %v831_v13 = vsel %vm358_vm4, %v825_v8, %v1963_v12  ;;  %vm1054_vm4 = vcmask 261120  }
 0x2bc   : > { %v891_v16 = vpop.permute.xlu0 %890  ;;  %1067 = vmatprep.subr.bf16.mxu0 %v831_v13 }
 0x2bd   : > { %1068 = vmatpush1.bf16.msra.mxu0 %v830_v15 }
 0x2be   : > { %1069 = vmatprep.subr.bf16.mxu0 %v851_v17  ;;  %v883_v18 = vpop.permute.xlu1 %882 }
 0x2bf   : > { %v894_v36 = vsel %vm413_vm13, %v883_v18, %v885_v1 }
 0x2c0   : > { %v889_v20 = vpop.permute.xlu0 %888 }
 0x2c1   : > { %1070 = vmatpush1.bf16.msra.mxu0 %v850_v19  ;;  %v896_v41 = vsel %vm413_vm13, %v889_v20, %v891_v16 }
 0x2c2   : > { %v1971_v21 = vpop.permute.xlu1 %848 }
 0x2c3   : > { %v853_v22 = vsel %vm373_vm8, %v847_v10, %v1971_v21  ;;  %vm1603_vm8 = vmmov 0  }
 0x2c4   : > { %v1976_v24 = vpop.permute.xlu0 %980  ;;  %1071 = vmatprep.subr.bf16.mxu0 %v853_v22 }
 0x2c5   : > { %1072 = vmatpush1.bf16.msra.mxu0 %v852_v23  ;;  %v985_v11 = vsel %vm482_vm11, %v979_v6, %v1976_v24 }
 0x2c6   : > { %1073 = vmatprep.subr.bf16.mxu0 %v873_v25  ;;  %1116 = vmatprep.subr.bf16.mxu1 %v985_v11  ;;  %v907_v27 = vpop.permute.xlu1 %906 }
 0x2c7   : > { %1117 = vmatpush1.bf16.msra.mxu1 %v984_v26 }
 0x2c8   : > { %v1989_v30 = vpop.permute.xlu0 %870  ;;  %1464 = vmatprep.subr.bf16.mxu1 %v887_v61 }
 0x2c9   : > { %1074 = vmatpush1.bf16.msra.mxu0 %v872_v29  ;;  %v875_v31 = vsel %vm391_vm9, %v869_v9, %v1989_v30  ;;  %vm1376_vm9 = vcmask 258048  }
 0x2ca   : > { %1075 = vmatprep.subr.bf16.mxu0 %v875_v31  ;;  %v905_v60 = vpop.permute.xlu1 %904  ;;  %1452 = vmatmul.mubr.msk.bf16.vlgmr.msra.gmra.mrb[4].mxu1 %vm1054_vm4, %v1986_v28 }
 0x2cb   : > { %1465 = vmatpush3.bf16.msra.mxu1 %v1863_v7  ;;  %1156 = vmatprep.mubr.bf16.mxu1 %v1598_v62  ;;  %v916_v45 = vsel %vm434_vm15, %v905_v60, %v907_v27 }
 0x2cc   : > { %v909_v14 = vpop.permute.xlu0 %908 }
 0x2cd   : > { %1076 = vmatpush1.bf16.msra.mxu0 %v874_v32  ;;  %v917_v43 = vsel %vm434_vm15, %v907_v27, %v909_v14 }
 0x2ce   : > { %1077 = vmatprep.subr.bf16.mxu0 %v895_v33  ;;  %v929_v34 = vpop.permute.xlu1 %928 }
 0x2d0   : > { %v913_v37 = vpop.permute.xlu0 %912 }
 0x2d1   : > { %1078 = vmatpush1.bf16.msra.mxu0 %v894_v36 }
 0x2d2   : > { %v893_v7 = vpop.permute.xlu1 %892  ;;  %1453 = vmatmul.mubr.msk.bf16.gmra.mrb[8].mxu1 %vm1054_vm4, %v2002_v35 }
 0x2d3   : > { %1466 = vmatprep.subr.bf16.mxu1 %v893_v7  ;;  %v897_v38 = vsel %vm413_vm13, %v891_v16, %v893_v7  ;;  %1199 = vmatprep.mubr.bf16.mxu1 %v1921_v40 }
 0x2d4   : > { %v911_v42 = vpop.permute.xlu0 %910  ;;  %1079 = vmatprep.subr.bf16.mxu0 %v897_v38  ;;  %1467 = vmatpush3.bf16.msra.mxu1 %v1888_v39 }
 0x2d5   : > { %1080 = vmatpush1.bf16.msra.mxu0 %v896_v41  ;;  %1468 = vmatprep.subr.bf16.mxu1 %v909_v14  ;;  %v918_v48 = vsel %vm434_vm15, %v911_v42, %v913_v37 }
 0x2d6   : > { %1081 = vmatprep.subr.bf16.mxu0 %v917_v43  ;;  %v927_v44 = vpop.permute.xlu1 %926 }
 0x2d7   : > { %v938_v52 = vsel %vm451_vm2, %v927_v44, %v929_v34 }
 0x2d8   : > { %v931_v46 = vpop.permute.xlu0 %930  ;;  %1469 = vmatpush3.bf16.msra.mxu1 %v1949_v49 }
 0x2d9   : > { %1082 = vmatpush1.bf16.msra.mxu0 %v916_v45  ;;  %v939_v39 = vsel %vm451_vm2, %v929_v34, %v931_v46 }
 0x2da   : > { %v915_v47 = vpop.permute.xlu1 %914 }
 0x2db   : > { %1470 = vmatprep.subr.bf16.mxu1 %v915_v47  ;;  %v919_v40 = vsel %vm434_vm15, %v913_v37, %v915_v47 }
 0x2dc   : > { %v935_v3 = vpop.permute.xlu0 %934  ;;  %1083 = vmatprep.subr.bf16.mxu0 %v919_v40  ;;  %1471 = vmatpush3.bf16.msra.mxu1 %v1963_v12 }
 0x2dd   : > { %1084 = vmatpush1.bf16.msra.mxu0 %v918_v48  ;;  %1472 = vmatprep.subr.bf16.mxu1 %v931_v46 }
 0x2de   : > { %1085 = vmatprep.subr.bf16.mxu0 %v939_v39  ;;  %v951_v51 = vpop.permute.xlu1 %950 }
 0x2e0   : > { %v933_v49 = vpop.permute.xlu0 %932  ;;  %1473 = vmatpush3.bf16.msra.mxu1 %v1951_v50 }
 0x2e1   : > { %1086 = vmatpush1.bf16.msra.mxu0 %v938_v52  ;;  %v940_v57 = vsel %vm451_vm2, %v933_v49, %v935_v3 }
 0x2e2   : > { %v937_v53 = vpop.permute.xlu1 %936 }
 0x2e3   : > { %1474 = vmatprep.subr.bf16.mxu1 %v937_v53  ;;  %v941_v55 = vsel %vm451_vm2, %v935_v3, %v937_v53 }
 0x2e4   : > { %v953_v58 = vpop.permute.xlu0 %952  ;;  %1087 = vmatprep.subr.bf16.mxu0 %v941_v55  ;;  %1475 = vmatpush3.bf16.msra.mxu1 %v1971_v21 }
 0x2e5   : > { %1088 = vmatpush1.bf16.msra.mxu0 %v940_v57  ;;  %1476 = vmatprep.subr.bf16.mxu1 %v953_v58  ;;  %v961_v59 = vsel %vm469_vm7, %v951_v51, %v953_v58 }
 0x2e6   : > { %1089 = vmatprep.subr.bf16.mxu0 %v961_v59  ;;  %v949_v61 = vpop.permute.xlu1 %948 }
 0x2e7   : > { %v960_v63 = vsel %vm469_vm7, %v949_v61, %v951_v51 }
 0x2e8   : > { %v957_v50 = vpop.permute.xlu0 %956  ;;  %1477 = vmatpush3.bf16.msra.mxu1 %v1958_v56  ;;  %v1581_v56 = vld [vmem:[%s2063_s4 + $0x18] ss:$12 sps:$4 sm:$0xff]  }
 0x2e9   : > { %1090 = vmatpush1.bf16.msra.mxu0 %v960_v63 }
 0x2ea   : > { %v959_v0 = vpop.permute.xlu1 %958 }
 0x2eb   : > { %1478 = vmatprep.subr.bf16.mxu1 %v959_v0  ;;  %v963_v1 = vsel %vm469_vm7, %v957_v50, %v959_v0 }
 0x2ec   : > { %v955_v4 = vpop.permute.xlu0 %954  ;;  %1091 = vmatprep.subr.bf16.mxu0 %v963_v1  ;;  %1479 = vmatpush3.bf16.msra.mxu1 %v1989_v30 }
 0x2ed   : > { %v962_v6 = vsel %vm469_vm7, %v955_v4, %v957_v50  ;;  %1507 = vmatprep.subr.bf16.mxu1 %v1956_v54 }
 0x2ee   : > { %1092 = vmatpush1.bf16.msra.mxu0 %v962_v6 }
 0x2ef   : > { %1200 = vmatmul.mubr.bf16.vlgmr.msra.gmra.mrb[12].mxu1 %v1576_v2 }
 0x2f0   : > { %1508 = vmatpush3.bf16.msra.mxu1 %v1956_v54  ;;  %1207 = vmatprep.mubr.bf16.mxu1 %v1579_v5 }
 0x2f1   : > { %1094 = vmatmul.mubr.bf16.vlgmr.msra.gmra.mrb[8].mxu0 %v1576_v2  ;;  %1509 = vmatprep.subr.bf16.mxu1 %v1976_v24 }
 0x2f2   : > { %1103 = vmatprep.mubr.bf16.mxu0 %v1579_v5 }
 0x2f4   : > { %1510 = vmatpush3.bf16.msra.mxu1 %v1976_v24 }
 0x2f7   : > { %1208 = vmatmul.mubr.bf16.gmra.mrb[16].mxu1 %v1581_v56 }
 0x2f8   : > { %1511 = vmatprep.mubr.msk.bf16.mxu1 %vm1054_vm4, %v1986_v28 }
 0x2f9   : > { %1104 = vmatmul.mubr.bf16.gmra.mrb[12].mxu0 %v1581_v56 }
 0x2fb   : > { %v1007_v18 = vpop.permute.xlu1 %1006 }
 0x2fd   : > { %v1012_v11 = vpop.permute.xlu0 %1011 }
 0x2ff   : > { %1512 = vmatmul.mubr.msk.bf16.vlgmr.msra.gmra.mrb[20].mxu1 %vm1054_vm4, %v2002_v35  ;;  %v1017_v34 = vpop.permute.xlu1 %1016 }
 0x300   : > { %1325 = vmatprep.mubr.bf16.mxu1 %v1598_v62 }
 0x301   : > { %v1022_v40 = vpop.permute.xlu0 %1021 }
 0x39d   : > { %v1148_v54 = vpop.f32.mrb[4].mxu1 }
 0x39e   : > { %v1150_v8 = vpop.f32.mrb[5].mxu1 }
 0x39f   : > { %v1152_v9 = vpop.f32.mrb[6].mxu1 }
 0x3a0   : > { %v1154_v10 = vpop.f32.mrb[7].mxu1 }
 0x3a5   : > { %v1158_v12 = vpop.f32.mrb[8].mxu1 }
 0x3a6   : > { %v1160_v13 = vpop.f32.mrb[9].mxu1 }
 0x3a7   : > { %v1162_v15 = vpop.f32.mrb[10].mxu1 }
 0x3a8   : > { %v1164_v16 = vpop.f32.mrb[11].mxu1 }
 0x3c2   : > { %v1480_v17 = vpop.f32.mrb[12].mxu1 }
 0x3c3   : > { %v1481_v19 = vpop.f32.mrb[13].mxu1 }
 0x3c4   : > { %v1482_v20 = vadd.f32 %v1481_v19, %v1480_v17  ;;  %v1095_v21 = vpop.f32.mrb[8].mxu0  ;;  %v1483_v22 = vpop.f32.mrb[14].mxu1 }
 0x3c5   : > { %v1096_v23 = vadd.f32 %v1095_v21, %v1007_v18  ;;  %v1097_v24 = vpop.f32.mrb[9].mxu0  ;;  %v1484_v25 = vpop.f32.mrb[15].mxu1 }
 0x3c6   : > { %v1098_v26 = vadd.f32 %v1097_v24, %v1007_v18  ;;  %v1485_v62 = vadd.f32 %v1484_v25, %v1483_v22  ;;  %v1099_v27 = vpop.f32.mrb[10].mxu0  ;;  %v1202_v50 = vadd.f32 %v1482_v20, %v1007_v18  ;;  %v1277_v22 = vld [vmem:[%s2065_s6] sm:$0x7]  ;;  %v1602_v24 = vmov 0.0   ;;  %v1288_v25 = vpop.permute.xlu1 %1287 }
 0x3c7   : > { %v1149_v28 = vadd.f32 %v1148_v54, %v1096_v23  ;;  %v1100_v29 = vadd.f32 %v1099_v27, %v1012_v11  ;;  %v1101_v30 = vpop.f32.mrb[11].mxu0 }
 0x3c8   : > { %v1151_v31 = vadd.f32 %v1150_v8, %v1098_v26  ;;  %v1102_v60 = vadd.f32 %v1101_v30, %v1012_v11 }
 0x3c9   : > { %v1153_v32 = vadd.f32 %v1152_v9, %v1100_v29  ;;  %v1265_v35 = vmax.f32 %v1149_v28, 0.0  ;;  %v1205_v9 = vadd.f32 %v1485_v62, %v1012_v11 }
 0x3ca   : > { %v1155_v14 = vadd.f32 %v1154_v10, %v1102_v60  ;;  %v1486_v33 = vpop.f32.mrb[16].mxu1  ;;  %v1266_v7 = vmax.f32 %v1151_v31, 0.0 }
 0x3cb   : > { %v1268_v36 = vmax.f32 %v1153_v32, 0.0  ;;  %v1487_v37 = vpop.f32.mrb[17].mxu1 }
 0x3cc   : > { %v1269_v38 = vmax.f32 %v1155_v14, 0.0  ;;  %v1488_v41 = vadd.f32 %v1487_v37, %v1486_v33  ;;  %v1105_v42 = vpop.f32.mrb[12].mxu0  ;;  %v1489_v43 = vpop.f32.mrb[18].mxu1 }
 0x3cd   : > { %v1278_v44 = vpack.c.bf16 %v1268_v36, %v1265_v35  ;;  %v1106_v45 = vadd.f32 %v1105_v42, %v1017_v34  ;;  %v1107_v46 = vpop.f32.mrb[13].mxu0  ;;  %v1490_v47 = vpop.f32.mrb[19].mxu1 }
 0x3ce   : > { %v1108_v48 = vadd.f32 %v1107_v46, %v1017_v34  ;;  %v1491_v3 = vadd.f32 %v1490_v47, %v1489_v43  ;;  %v1109_v39 = vpop.f32.mrb[14].mxu0  ;;  %v1279_v51 = vpack.c.bf16 %v1269_v38, %v1266_v7  ;;  %v1210_v59 = vadd.f32 %v1488_v41, %v1017_v34 }
 0x3cf   : > { %v1159_v52 = vadd.f32 %v1158_v12, %v1106_v45  ;;  %v1110_v49 = vadd.f32 %v1109_v39, %v1022_v40  ;;  %v1111_v53 = vpop.f32.mrb[15].mxu0 }
 0x3d0   : > { %v1161_v55 = vadd.f32 %v1160_v13, %v1108_v48  ;;  %v1112_v57 = vadd.f32 %v1111_v53, %v1022_v40  ;;  %1293 = vmatprep.subr.bf16.mxu1 %v1279_v51  ;;  %v1213_v5 = vadd.f32 %v1491_v3, %v1022_v40 }
 0x3d1   : > { %v1163_v58 = vadd.f32 %v1162_v15, %v1110_v49  ;;  %1294 = vmatpush1.bf16.msra.mxu1 %v1278_v44  ;;  %v1271_v0 = vmax.f32 %v1159_v52, 0.0 }
 0x3d2   : > { %v1165_v61 = vadd.f32 %v1164_v16, %v1112_v57  ;;  %v1513_v63 = vpop.f32.mrb[20].mxu1  ;;  %v1272_v6 = vmax.f32 %v1161_v55, 0.0 }
 0x3d3   : > { %v1274_v1 = vmax.f32 %v1163_v58, 0.0  ;;  %v1259_v2 = vadd.f32 %v1513_v63, %v1210_v59  ;;  %v1250_v4 = vpop.f32.mrb[21].mxu1 }
 0x3d4   : > { %v1275_v56 = vmax.f32 %v1165_v61, 0.0  ;;  %v1251_v54 = vadd.f32 %v1250_v4, %v1202_v50  ;;  %v1514_v8 = vpop.f32.mrb[22].mxu1 }
 0x3d5   : > { %v1281_v10 = vpack.c.bf16 %v1274_v1, %v1271_v0  ;;  %v1262_v12 = vadd.f32 %v1514_v8, %v1213_v5  ;;  %v1253_v13 = vpop.f32.mrb[23].mxu1  ;;  %v1273_v19 = vmax.f32 %v1259_v2, 0.0 }
 0x3d6   : > { %v1254_v17 = vadd.f32 %v1253_v13, %v1205_v9  ;;  %v1282_v15 = vpack.c.bf16 %v1275_v56, %v1272_v6  ;;  %v1267_v16 = vmax.f32 %v1251_v54, 0.0 }
 0x3d7   : > { %v1276_v21 = vmax.f32 %v1262_v12, 0.0 }
 0x3d8   : > { %v1270_v18 = vmax.f32 %v1254_v17, 0.0  ;;  %1295 = vmatprep.subr.bf16.mxu1 %v1282_v15 }
 0x3d9   : > { %v1283_v20 = vpack.c.bf16 %v1276_v21, %v1273_v19  ;;  %1296 = vmatpush1.bf16.msra.mxu1 %v1281_v10 }
 0x3da   : > { %v1280_v23 = vpack.c.bf16 %v1270_v18, %v1267_v16  ;;  %1515 = vmatprep.subr.bf16.mxu1 %v1602_v24 }
 0x3dc   : > { %1456 = vmatmul.mubr.msk.bf16.vlgmr.msra.gmra.mrb[24].mxu1 %vm1054_vm4, %v1277_v22 }
 0x3dd   : > { %1516 = vmatpush3.bf16.msra.mxu1 %v1280_v23  ;;  %1519 = vmatprep.mubr.msk.bf16.mxu1 %vm1603_vm8, %v1602_v24 }
 0x3de   : > { %1517 = vmatprep.subr.bf16.mxu1 %v1602_v24 }
 0x3e1   : > { %1518 = vmatpush3.bf16.msra.mxu1 %v1283_v20 }
 0x3e4   : > { %1520 = vmatmul.mubr.msk.bf16.vlgmr.msra.gmra.mrb[28].mxu1 %vm1054_vm4, %v1277_v22 }
 0x4af   : > { %v1327_v11 = vpop.f32.mrb[24].mxu1 }
 0x4b0   : > { %v1328_v26 = vadd.f32 %v1327_v11, %v1288_v25  ;;  %v1329_v62 = vpop.f32.mrb[25].mxu1 }
 0x4b1   : > { %v1330_v27 = vadd.f32 %v1329_v62, %v1288_v25  ;;  %v1331_v28 = vpop.f32.mrb[26].mxu1 }
 0x4b2   : > { %1374 = vst [vmem:[%s305_s22] sm:$0x1f] %v1328_v26  ;;  %v1332_v29 = vpop.f32.mrb[27].mxu1 }
 0x4b3   : > { %1375 = vst [vmem:[%s305_s22 + $0x8] sm:$0x1f] %v1330_v27 }
 0x4b7   : > { %v1368_v30 = vpop.f32.mrb[28].mxu1 }
 0x4b8   : > { %v1369_v31 = vadd.f32 %v1368_v30, %v1288_v25  ;;  %v1521_v60 = vpop.f32.mrb[29].mxu1 }
 0x4b9   : > { %v1371_v32 = vpop.f32.mrb[30].mxu1 }
 0x4ba   : > { %1377 = vst.msk [vmem:[%s305_s22 + $0x10] sm:$0x1f] %vm1376_vm9, %v1369_v31  ;;  %v1522_v14 = vpop.f32.mrb[31].mxu1 }
 0x4bb PF: > { %s18_s27 = sadd.s32 1, %s1588_s27  }
 0x4bc   : > { %p15_p4 = scmp.ge.s32.totalorder %s18_s27, 4  }
 0x4be   :  { %17 = sbr.rel (!%p15_p4) target bundleno = 1 (0x1), region = 82 }

</bundles_post_ra>
